<compile_context>
chip_gen: v5e
topology: v5e:2x2
jax: 0.10.0
libtpu: 0.0.40
codegen_flags: <defaults>
</compile_context>

<pallas_src>
import jax
import jax.numpy as jnp
from jax import lax
from jax.experimental import pallas as pl
from jax.experimental.pallas import tpu as pltpu


# ----------------------------------------------------------------------------
# Kernels
# ----------------------------------------------------------------------------
def _lm_head_kernel_fused(x_ref, w_ref, b_ref, o_ref):
    # Single K step: x_ref (TM, E), w_ref (TN, E), b_ref (1, TN) f32, o_ref (TM, TN).
    acc = lax.dot_general(
        x_ref[...], w_ref[...],
        dimension_numbers=(((1,), (1,)), ((), ())),   # contract last dims, no transpose
        preferred_element_type=jnp.float32,
    )
    o_ref[...] = (acc + b_ref[...]).astype(o_ref.dtype)


def _lm_head_kernel_ksplit(x_ref, w_ref, b_ref, o_ref, acc_ref):
    # K split: x_ref (NK, TM, TK) full-E resident, w_ref (TN, TK) streamed,
    # b_ref (1, TN) f32, o_ref (TM, TN), acc_ref (TM, TN) f32 scratch.
    k = pl.program_id(2)

    @pl.when(k == 0)
    def _():
        acc_ref[...] = jnp.zeros_like(acc_ref)

    acc_ref[...] += lax.dot_general(
        x_ref[k], w_ref[...],                         # x chunk via leading-dim index
        dimension_numbers=(((1,), (1,)), ((), ())),
        preferred_element_type=jnp.float32,
    )

    @pl.when(k == pl.num_programs(2) - 1)
    def _():
        o_ref[...] = (acc_ref[...] + b_ref[...]).astype(o_ref.dtype)


# ----------------------------------------------------------------------------
# Tile planning
# ----------------------------------------------------------------------------
def _vmem_budget():
    """(tile_budget_bytes, vmem_capacity_bytes) for this TPU generation."""
    cap = 64 * 1024 * 1024                       # conservative default (v7x per-TC)
    try:
        info = pltpu.get_tpu_info()
        cap = int(getattr(info, "vmem_capacity_bytes", 0)) or cap
    except Exception:
        pass
    if cap >= 96 * 1024 * 1024:                  # v5e / v6e: 128 MiB per TensorCore
        return 90 * 1024 * 1024, cap
    return 44 * 1024 * 1024, cap                 # v7x: 64 MiB physical per TensorCore


def _footprint(tm, tn, tk, E, in_isz, out_isz, split):
    """VMEM bytes for one tile plan (double-buffered streams + accumulator)."""
    fp = 2 * tm * E * in_isz                     # full-E resident x (double-buffered)
    fp += 2 * tn * tk * in_isz                   # streamed weight tiles
    fp += 2 * tn * 4                             # bias tile (f32, tiny)
    fp += 2 * tm * tn * out_isz                  # output tiles
    if split:
        fp += tm * tn * 4                        # f32 accumulator scratch
    return fp


def _pick_tiles(M, V, E, in_isz, out_isz, budget):
    # tm: weight-stream bytes scale with ceil(M/tm) -> as large as VMEM allows.
    # Multiple of 8 (or == M via the full-dim exemption).
    if M <= 1024:
        tm = M
    else:
        tm = 8
        for cand in (1024, 512, 256, 128, 64, 32, 16, 8):
            if 2 * cand * E * in_isz <= budget // 2:
                tm = cand
                break

    # tn: lane-dense output tiles (multiple of 128 or == V).  Decode-shaped
    # calls (tiny M) are purely weight-DMA bound -> bigger vocab tiles.
    if V <= 512:
        tn = V
    elif M <= 256:
        tn = 2048 if V >= 2048 else max(128, (V // 128) * 128)
    else:
        tn = 512

    # tk: keep the whole contraction in one grid step if it fits.
    if _footprint(tm, tn, E, E, in_isz, out_isz, False) <= budget:
        return tm, tn, E

    # Otherwise split K, but only on exact divisors of E (a padded K-edge block
    # would corrupt the sum).  Prefer 256-aligned chunks (2x256x256 MXU).
    divs = [d for d in range(128, E, 128) if E % d == 0]
    cands = sorted((d for d in divs if d % 256 == 0), reverse=True) + \
            sorted((d for d in divs if d % 256 != 0), reverse=True)
    for c in cands:
        if _footprint(tm, tn, c, E, in_isz, out_isz, True) <= budget:
            return tm, tn, c

    # Last resort: smallest K chunk, then shrink tn (multiples of 128), then tm.
    tk = cands[-1] if cands else E
    split = tk != E
    while _footprint(tm, tn, tk, E, in_isz, out_isz, split) > budget and tn > 128:
        tn = max(128, ((tn // 2) // 128) * 128)
    while (_footprint(tm, tn, tk, E, in_isz, out_isz, split) > budget
           and tm > 8 and tm != M):
        tm = max(8, ((tm // 2) // 8) * 8)
    # TODO(synk): if still over budget (pathological E), fall back to
    # re-streaming x per (j, k) instead of keeping it full-E resident.
    return tm, tn, tk


# ----------------------------------------------------------------------------
# Wrapper
# ----------------------------------------------------------------------------
def lm_head(x, weight, bias, *, compute_dtype=jnp.bfloat16, tm=None, tn=None, tk=None):
    """x: (B, S, E), weight: (V, E), bias: (V,) -> (B, S, V) in x's dtype.

    compute_dtype: dtype fed to the MXU (default bf16; accumulation is f32).
    Pass None to keep the input dtype end-to-end.
    """
    B, S, E = x.shape
    V, E_w = weight.shape
    assert E == E_w, "embed dims must match"
    M = B * S
    out_dtype = x.dtype

    if compute_dtype is not None:
        x = x.astype(compute_dtype)
        weight = weight.astype(compute_dtype)
    in_isz = jnp.dtype(x.dtype).itemsize
    out_isz = jnp.dtype(out_dtype).itemsize

    x2d = x.reshape(M, E)
    bias2d = bias.astype(jnp.float32).reshape(1, V)

    budget, vmem_cap = _vmem_budget()
    a_tm, a_tn, a_tk = _pick_tiles(M, V, E, in_isz, out_isz, budget)
    tm = a_tm if tm is None else min(tm, M)
    tn = a_tn if tn is None else min(tn, V)
    tk = a_tk if tk is None else min(tk, E)
    if tk != E and E % tk != 0:
        raise ValueError(f"tk={tk} must divide E={E} exactly (or equal E)")

    nk = 1 if tk == E else E // tk
    split = nk > 1
    fp = _footprint(tm, tn, tk, E, in_isz, out_isz, split)

    # Scoped VMEM limit: tile footprint + margin, capped per generation
    # (~52 MiB on v7x's 64 MiB, ~100 MiB on v5e/v6e's 128 MiB).
    limit_cap = min(vmem_cap - 12 * 1024 * 1024, 100 * 1024 * 1024)
    vmem_limit = int(min(limit_cap, max(32 * 1024 * 1024, fp * 5 // 4 + 2 * 1024 * 1024)))

    # Cost estimate with the true weight re-stream factor (ceil(M/tm) passes).
    m_passes = pl.cdiv(M, tm)
    cost = pl.CostEstimate(
        flops=2 * M * V * E,
        transcendentals=0,
        bytes_accessed=(m_passes * V * E * in_isz   # weight streamed once per row-tile
                        + M * E * in_isz            # x fetched once per row-tile (resident)
                        + M * V * out_isz           # output
                        + m_passes * V * 4),        # bias
    )

    grid_m, grid_v = pl.cdiv(M, tm), pl.cdiv(V, tn)

    if not split:
        # Single K step: no accumulator scratch, dot + bias straight to the output.
        grid = (grid_m, grid_v)
        in_specs = [
            pl.BlockSpec((tm, E), lambda i, j: (i, 0)),     # x row-tile (fetched once per i)
            pl.BlockSpec((tn, E), lambda i, j: (j, 0)),     # weight tile
            pl.BlockSpec((1, tn), lambda i, j: (0, j)),     # bias tile
        ]
        out_spec = pl.BlockSpec((tm, tn), lambda i, j: (i, j))
        scratch = ()
        kernel = _lm_head_kernel_fused
        dims = ("parallel", "parallel")
        x_in = x2d
    else:
        # K split: keep x full-E resident across j and k.  Reshape to
        # (nk, M, tk) so the kernel slices the K chunk with a leading-dim
        # index (clean dense (tm, tk) layout, no per-j re-streaming).  The
        # one-off transpose is negligible vs the V*E weight stream.
        x_in = x2d.reshape(M, nk, tk).transpose(1, 0, 2)
        grid = (grid_m, grid_v, nk)
        in_specs = [
            pl.BlockSpec((nk, tm, tk), lambda i, j, k: (0, i, 0)),  # resident x
            pl.BlockSpec((tn, tk), lambda i, j, k: (j, k)),         # weight stream
            pl.BlockSpec((1, tn), lambda i, j, k: (0, j)),          # bias tile
        ]
        out_spec = pl.BlockSpec((tm, tn), lambda i, j, k: (i, j))
        scratch = (pltpu.VMEM((tm, tn), jnp.float32),)
        kernel = _lm_head_kernel_ksplit
        dims = ("parallel", "parallel", "arbitrary")

    out2d = pl.pallas_call(
        kernel,
        out_shape=jax.ShapeDtypeStruct((M, V), out_dtype),
        grid_spec=pltpu.PrefetchScalarGridSpec(
            num_scalar_prefetch=0,
            grid=grid,
            in_specs=in_specs,
            out_specs=out_spec,
            scratch_shapes=scratch,
        ),
        compiler_params=pltpu.CompilerParams(
            dimension_semantics=dims,
            vmem_limit_bytes=vmem_limit,
        ),
        cost_estimate=cost,
    )(x_in, weight, bias2d)

    return out2d.reshape(B, S, V)


# ----------------------------------------------------------------------------
# Self-test
# ----------------------------------------------------------------------------
if __name__ == "__main__":
    key = jax.random.PRNGKey(0)
    k1, k2, k3, k4 = jax.random.split(key, 4)

    # --- Test 1: module-sized shapes (single-K fused path) ----------------
    B, S, E, V = 2, 8, 32, 256
    x = jax.random.normal(k1, (B, S, E), dtype=jnp.float32)
    # Shared input-embedding weight (vocab_size, embed_dim), deterministic init.
    weight = jax.random.normal(k2, (V, E), dtype=jnp.float32) * (1.0 / (E ** 0.5))
    bias = jnp.zeros((V,), dtype=jnp.float32)   # nn.Parameter(torch.zeros(vocab_size))

    out = lm_head(x, weight, bias)
    jax.block_until_ready(out)
    assert out.shape == (B, S, V)
    ref = (jnp.einsum("bse,ve->bsv",
                      x.astype(jnp.bfloat16), weight.astype(jnp.bfloat16),
                      preferred_element_type=jnp.float32) + bias).astype(x.dtype)
    assert jnp.allclose(out, ref, atol=2e-2, rtol=2e-2)

    # --- Test 2: exercise the K-split (resident-x) path with a forced tk --
    B2, S2, E2, V2 = 1, 16, 512, 384
    x2 = jax.random.normal(k3, (B2, S2, E2), dtype=jnp.float32)
    w2 = jax.random.normal(k4, (V2, E2), dtype=jnp.float32) * (1.0 / (E2 ** 0.5))
    b2 = jnp.zeros((V2,), dtype=jnp.float32)

    out2 = lm_head(x2, w2, b2, tk=256)          # E2 % tk == 0 -> 2 K steps
    jax.block_until_ready(out2)
    assert out2.shape == (B2, S2, V2)
    ref2 = (jnp.einsum("bse,ve->bsv",
                       x2.astype(jnp.bfloat16), w2.astype(jnp.bfloat16),
                       preferred_element_type=jnp.float32) + b2).astype(x2.dtype)
    assert jnp.allclose(out2, ref2, atol=2e-2, rtol=2e-2)

    print("KERNEL_OK")
</pallas_src>

<mosaic_0001>
module attributes {stable_mosaic.version = 11 : i64} {
  func.func @_lm_head_kernel_fused(%arg0: i32, %arg1: i32, %arg2: memref<16x32xbf16, #tpu.memory_space<vmem>>, %arg3: memref<256x32xbf16, #tpu.memory_space<vmem>>, %arg4: memref<1x256xf32, #tpu.memory_space<vmem>>, %arg5: memref<16x256xf32, #tpu.memory_space<vmem>>) attributes {dimension_semantics = [#tpu.dimension_semantics<parallel>, #tpu.dimension_semantics<parallel>], iteration_bounds = array<i64: 1, 1>, scalar_prefetch = 0 : i64, scratch_operands = 0 : i64, tpu.core_type = #tpu.core_type<tc>, window_params = [{transform_indices = @transform_0, window_bounds = array<i64: 16, 32>}, {transform_indices = @transform_1, window_bounds = array<i64: 256, 32>}, {transform_indices = @transform_2, window_bounds = array<i64: 1, 256>}, {transform_indices = @transform_3, window_bounds = array<i64: 16, 256>}]} {
    %c0 = arith.constant 0 : index
    %c0_0 = arith.constant 0 : index
    %0 = vector.load %arg2[%c0, %c0_0] : memref<16x32xbf16, #tpu.memory_space<vmem>>, vector<16x32xbf16>
    %c0_1 = arith.constant 0 : index
    %c0_2 = arith.constant 0 : index
    %1 = vector.load %arg3[%c0_1, %c0_2] : memref<256x32xbf16, #tpu.memory_space<vmem>>, vector<256x32xbf16>
    %cst = arith.constant dense<0.000000e+00> : vector<16x256xf32>
    %2 = tpu.matmul %0, %1, %cst {dimension_numbers = #tpu.dot_dimension_numbers<[1], [1], [0], [0], [0, 0, 1, 0], [], []>} : vector<16x32xbf16>, vector<256x32xbf16>, vector<16x256xf32> -> vector<16x256xf32>
    %c0_3 = arith.constant 0 : index
    %c0_4 = arith.constant 0 : index
    %3 = vector.load %arg4[%c0_3, %c0_4] : memref<1x256xf32, #tpu.memory_space<vmem>>, vector<1x256xf32>
    %4 = vector.broadcast %3 : vector<1x256xf32> to vector<16x256xf32>
    %5 = arith.addf %2, %4 : vector<16x256xf32>
    %c0_5 = arith.constant 0 : index
    %c0_6 = arith.constant 0 : index
    %6 = vector.load %arg5[%c0_5, %c0_6] : memref<16x256xf32, #tpu.memory_space<vmem>>, vector<16x256xf32>
    tpu.vector_store %arg5[%c0_5, %c0_6], %5 {strides = array<i32>} : memref<16x256xf32, #tpu.memory_space<vmem>>, vector<16x256xf32>,
    return
  }
  func.func @transform_0(%arg0: i32, %arg1: i32) -> (i32, i32) {
    %c0_i32 = arith.constant 0 : i32
    %c0_i32_0 = arith.constant 0 : i32
    return %arg0, %c0_i32 : i32, i32
  }
  func.func @transform_1(%arg0: i32, %arg1: i32) -> (i32, i32) {
    %c0_i32 = arith.constant 0 : i32
    %c0_i32_0 = arith.constant 0 : i32
    return %arg1, %c0_i32 : i32, i32
  }
  func.func @transform_2(%arg0: i32, %arg1: i32) -> (i32, i32) {
    %c0_i32 = arith.constant 0 : i32
    %c0_i32_0 = arith.constant 0 : i32
    return %c0_i32, %arg1 : i32, i32
  }
  func.func @transform_3(%arg0: i32, %arg1: i32) -> (i32, i32) {
    %c0_i32 = arith.constant 0 : i32
    return %arg0, %arg1 : i32, i32
  }
}

</mosaic_0001>

<bundles_post_ra>
// kernel: tpu_custom_call.1
= control target key start
LH: loop header
LB: loop body
LE: loop exit
PB: predicated region body
PF: predicated region fallthrough
CT: control target
= control target key end

     0   :  { %vm140_vm0 = vcmask 261120   ;;  %s456_s0 = inlined_call_operand.vmem [shape: bf16[16,32], index: 0, kind: input, shape index: {}]   ;;  %s457_s1 = inlined_call_operand.vmem [shape: bf16[256,32], index: 1, kind: input, shape index: {}]   ;;  %s458_s2 = inlined_call_operand.vmem [shape: f32[1,256], index: 2, kind: input, shape index: {}]   ;;  %s459_s3 = inlined_call_operand.hbm [shape: f32[16,256], index: 3, kind: output, shape index: {}]  }
   0x1   :  { %v320_v0 = vld [vmem:[%s457_s1 + $0x38] sm:$0xff]  ;;  %v319_v4 = vld [vmem:[%s457_s1 + $0x30] sm:$0xff] }
   0x2   :  { %v328_v1 = vld [vmem:[%s457_s1 + $0x78] sm:$0xff]  ;;  %v166_v2 = vsel %vm140_vm0, %v320_v0, 0  ;;  %v327_v5 = vld [vmem:[%s457_s1 + $0x70] sm:$0xff] }
   0x3   :  { %v190_v3 = vsel %vm140_vm0, %v328_v1, 0  ;;  %192 = vmatpush.bf16.xpose.msra.mxu0 %v166_v2 }
   0x4   :  { %206 = vmatpush.bf16.xpose.msra.mxu1 %v190_v3 }
   0x5   :  { %8 = vsyncpa [#allocation3], 0  ;;  %v163_v6 = vsel %vm140_vm0, %v319_v4, 0  ;;  %v187_v7 = vsel %vm140_vm0, %v327_v5, 0  ;;  %v318_v8 = vld [vmem:[%s457_s1 + $0x28] sm:$0xff]  ;;  %v317_v12 = vld [vmem:[%s457_s1 + $0x20] sm:$0xff] }
   0x6   :  { %v326_v9 = vld [vmem:[%s457_s1 + $0x68] sm:$0xff]  ;;  %v160_v10 = vsel %vm140_vm0, %v318_v8, 0  ;;  %v325_v13 = vld [vmem:[%s457_s1 + $0x60] sm:$0xff]  ;;  %v157_v14 = vsel %vm140_vm0, %v317_v12, 0  ;;  %v316_v16 = vld [vmem:[%s457_s1 + $0x18] sm:$0xff]  ;;  %s230_s23 = sshll.u32 %s459_s3, 4  ;;  %s231_s23 = int_to_ptr.hbm [resolvable:$true] %s230_s23 }
   0x7   :  { %v184_v11 = vsel %vm140_vm0, %v326_v9, 0  ;;  %v181_v15 = vsel %vm140_vm0, %v325_v13, 0  ;;  %v324_v17 = vld [vmem:[%s457_s1 + $0x58] sm:$0xff]  ;;  %v154_v18 = vsel %vm140_vm0, %v316_v16, 0  ;;  %v315_v20 = vld [vmem:[%s457_s1 + $0x10] sm:$0xff]  ;;  %v314_v24 = vld [vmem:[%s457_s1 + $0x8] sm:$0xff] }
   0x8   :  { %v178_v19 = vsel %vm140_vm0, %v324_v17, 0  ;;  %v323_v21 = vld [vmem:[%s457_s1 + $0x50] sm:$0xff]  ;;  %v151_v22 = vsel %vm140_vm0, %v315_v20, 0  ;;  %v322_v25 = vld [vmem:[%s457_s1 + $0x48] sm:$0xff]  ;;  %v148_v26 = vsel %vm140_vm0, %v314_v24, 0  ;;  %v313_v28 = vld [vmem:[%s457_s1] sm:$0xff] }
   0x9   :  { %v175_v23 = vsel %vm140_vm0, %v323_v21, 0  ;;  %v172_v27 = vsel %vm140_vm0, %v322_v25, 0  ;;  %v321_v29 = vld [vmem:[%s457_s1 + $0x40] sm:$0xff]  ;;  %v145_v30 = vsel %vm140_vm0, %v313_v28, 0  ;;  %s358_s1 = smov [#allocation2]   ;;  %s360_s24 = smov 16  }
   0xa   :  { %v169_v31 = vsel %vm140_vm0, %v321_v29, 0  ;;  %v312_v32 = vld [vmem:[%s456_s0] sm:$0xff]  ;;  %s228_s21 = sshll.u32 %s358_s1, 4  ;;  %s229_s21 = int_to_ptr.vmem [resolvable:$true] %s228_s21 }
   0xb   :  { %193 = vmatpush.bf16.xpose.msra.mxu0 %v163_v6  ;;  %v49_v33 = vld [vmem:[%s458_s2] sm:$0x3]  ;;  %s359_s2 = smov 256  }
   0xc   :  { %207 = vmatpush.bf16.xpose.msra.mxu1 %v187_v7  ;;  %v51_v34 = vperm.slane %v49_v33, 0  ;;  %v52_v35 = vperm.slane %v49_v33, 1 }
  0x13   :  { %194 = vmatpush.bf16.xpose.msra.mxu0 %v160_v10 }
  0x14   :  { %208 = vmatpush.bf16.xpose.msra.mxu1 %v184_v11 }
  0x1b   :  { %195 = vmatpush.bf16.xpose.msra.mxu0 %v157_v14 }
  0x1c   :  { %209 = vmatpush.bf16.xpose.msra.mxu1 %v181_v15 }
  0x23   :  { %196 = vmatpush.bf16.xpose.msra.mxu0 %v154_v18 }
  0x24   :  { %210 = vmatpush.bf16.xpose.msra.mxu1 %v178_v19 }
  0x2b   :  { %197 = vmatpush.bf16.xpose.msra.mxu0 %v151_v22 }
  0x2c   :  { %211 = vmatpush.bf16.xpose.msra.mxu1 %v175_v23 }
  0x33   :  { %198 = vmatpush.bf16.xpose.msra.mxu0 %v148_v26 }
  0x34   :  { %212 = vmatpush.bf16.xpose.msra.mxu1 %v172_v27 }
  0x3b   :  { %199 = vmatpush.bf16.xpose.msra.mxu0 %v145_v30 }
  0x3c   :  { %213 = vmatpush.bf16.xpose.msra.mxu1 %v169_v31 }
  0x42   :  { %310 = vmatmul.msk.bf16.vlgmr.msra.gmra.mxu0 %vm140_vm0, %v312_v32 }
  0x43   :  { %311 = vmatmul.msk.bf16.vlgmr.msra.gmra.mxu1 %vm140_vm0, %v312_v32 }
  0xbf   :  { %v201_v36 = vpop.f32.mrf.mxu0 }
  0xc0   :  { %v215_v37 = vpop.f32.mrf.mxu1  ;;  %v202_v38 = vadd.f32 %v201_v36, %v51_v34 }
  0xc1   :  { %v216_v39 = vadd.f32 %v215_v37, %v52_v35 }
  0xc2   :  { %220 = vst [vmem:[#allocation2] sm:$0xff] %v202_v38 }
  0xc3   :  { %221 = vst [vmem:[#allocation2 + $0x8] sm:$0xff] %v216_v39 }
  0xc7   :  { %v203_v40 = vpop.f32.mrf.mxu0 }
  0xc8   :  { %v217_v41 = vpop.f32.mrf.mxu1  ;;  %v204_v42 = vadd.f32 %v203_v40, %v51_v34 }
  0xc9   :  { %v218_v43 = vadd.f32 %v217_v41, %v52_v35 }
  0xca   :  { %222 = vst [vmem:[#allocation2 + $0x10] sm:$0xff] %v204_v42 }
  0xcb   :  { %223 = vst [vmem:[#allocation2 + $0x18] sm:$0xff] %v218_v43 }
  0xcc   :  { %236 = dma.vmem_to_hbm [thread:$0]  %s229_s21, 512, %s231_s23, [#allocation3], %s359_s2, %s359_s2, %s360_s24  }
  0xcd   :  { %356 = dma.done.wait [#allocation3], 512  }
  0xce   :  { %357 = vsyncadd [#allocation3], 4294966784 }
  0xcf   :  { %241 = vsyncpa [#allocation3], 1 }

</bundles_post_ra>
